<compile_context>
chip_gen: v7x
topology: tpu7x:2x2x1
jax: 0.10.0
libtpu: 0.0.40
codegen_flags: <defaults>
</compile_context>

<pallas_src>
import jax
import jax.numpy as jnp
from jax.experimental import pallas as pl
from jax.experimental.pallas import tpu as pltpu

# ---------------------------------------------------------------------------
# Problem sizes (from the PyTorch module: input_size=6, neurons=32 hidden).
# ---------------------------------------------------------------------------
IN_FEATURES = 6
HIDDEN = 32          # "neurons" (fc3 output width; output_size=4 is unused in forward)

# Padded / tiled sizes.
IN_PAD = 8           # fc1 weight rows padded to one sublane group in the slab
H_PAD = 128          # hidden width padded to one full lane group
MAX_B_TILE = 1024    # upper bound on batch rows per grid step (sweepable)
MIN_B_TILE = 8       # sublane multiple

# Parameter-slab row offsets (all multiples of 8 -> aligned sublane slices).
W1_OFF = 0                       # rows [  0,   8) : fc1 weight (6x32 real)
B1_OFF = W1_OFF + IN_PAD         # row    8         : fc1 bias   (32 real)
W2_OFF = B1_OFF + 8              # rows [ 16, 144) : fc2 weight (32x32 real)
B2_OFF = W2_OFF + H_PAD          # row  144         : fc2 bias
W3_OFF = B2_OFF + 8              # rows [152, 280) : fc3 weight (32x32 real)
B3_OFF = W3_OFF + H_PAD          # row  280         : fc3 bias
SLAB_ROWS = B3_OFF + 8           # 288 rows x 128 lanes x 4 B = 144 KiB


def dqn_kernel(x_ref, p_ref, o_ref):
    """One batch tile: x (b_tile, 6) -> out (b_tile, 32)."""
    x = x_ref[...]                                      # (b_tile, IN_FEATURES)

    # Static slices into the VMEM-resident parameter slab.
    w1 = p_ref[W1_OFF:W1_OFF + IN_FEATURES, :]          # (6, H_PAD)
    b1 = p_ref[B1_OFF:B1_OFF + 1, :]                    # (1, H_PAD)
    w2 = p_ref[W2_OFF:W2_OFF + H_PAD, :]                # (H_PAD, H_PAD)
    b2 = p_ref[B2_OFF:B2_OFF + 1, :]
    w3 = p_ref[W3_OFF:W3_OFF + H_PAD, :]
    b3 = p_ref[B3_OFF:B3_OFF + 1, :]
    # Narrow (real-width) fc3 weight/bias for the final un-padded output matmul.
    w3n = p_ref[W3_OFF:W3_OFF + H_PAD, :HIDDEN]         # (H_PAD, HIDDEN)
    b3n = p_ref[B3_OFF:B3_OFF + 1, :HIDDEN]             # (1, HIDDEN)

    # fc1 + relu  (K=6 contraction; padded lanes carry zeros through the chain)
    h = jnp.maximum(jnp.dot(x, w1, preferred_element_type=jnp.float32) + b1, 0.0)
    # fc2 + relu
    h = jnp.maximum(jnp.dot(h, w2, preferred_element_type=jnp.float32) + b2, 0.0)
    # fc3 + relu
    h = jnp.maximum(jnp.dot(h, w3, preferred_element_type=jnp.float32) + b3, 0.0)
    # fc3 again (no relu), producing only the real 32 output columns
    out = jnp.dot(h, w3n, preferred_element_type=jnp.float32) + b3n

    o_ref[...] = out.astype(o_ref.dtype)                # (b_tile, HIDDEN) store


def _choose_b_tile(batch):
    """Largest tile <= MAX_B_TILE that keeps >= 2 grid steps when possible."""
    half = -(-batch // 2)                                # cdiv(batch, 2)
    half = -(-half // MIN_B_TILE) * MIN_B_TILE           # round up to sublane multiple
    return max(MIN_B_TILE, min(MAX_B_TILE, half))


def dqn_forward(x, param_slab, *, b_tile=None):
    """x: (B, IN_FEATURES) f32, param_slab: (SLAB_ROWS, H_PAD) f32 -> (B, HIDDEN)."""
    x = x.astype(jnp.float32)
    B = x.shape[0]
    if b_tile is None:
        b_tile = _choose_b_tile(B)
    n_tiles = -(-B // b_tile)
    B_padded = n_tiles * b_tile

    # Pad batch rows only when B is not a tile multiple (no feature padding).
    if B_padded != B:
        x_in = jnp.zeros((B_padded, IN_FEATURES), jnp.float32).at[:B].set(x)
    else:
        x_in = x

    out = pl.pallas_call(
        dqn_kernel,
        out_shape=jax.ShapeDtypeStruct((B_padded, HIDDEN), jnp.float32),
        grid_spec=pltpu.PrefetchScalarGridSpec(
            num_scalar_prefetch=0,
            grid=(n_tiles,),
            in_specs=[
                # Activations stream tile-by-tile (last dim == full array dim).
                pl.BlockSpec((b_tile, IN_FEATURES), lambda i: (i, 0)),
                # Parameter slab: same block for every grid step -> loaded once,
                # stays resident in VMEM across the whole batch grid.
                pl.BlockSpec((SLAB_ROWS, H_PAD), lambda i: (0, 0)),
            ],
            # Real-width output (32 == full array dim) -> no padded writeback,
            # no wrapper slice pass.
            out_specs=pl.BlockSpec((b_tile, HIDDEN), lambda i: (i, 0)),
        ),
        compiler_params=pltpu.CompilerParams(
            dimension_semantics=("parallel",),   # megacore split on v7x; harmless elsewhere
        ),
    )(x_in, param_slab)

    if B_padded != B:
        out = out[:B]
    return out


# ---------------------------------------------------------------------------
# Parameter construction / packing / pure-JAX reference
# ---------------------------------------------------------------------------
def init_params(key):
    """Deterministic nn.Linear-style init: U(-1/sqrt(fan_in), 1/sqrt(fan_in)).

    Weights are stored (in_features, out_features), i.e. transposed vs PyTorch,
    so the kernel computes x @ W + b. Biases are (out_features,) vectors.
    """
    keys = jax.random.split(key, 6)

    def linear(kw, kb, fan_in, fan_out):
        bound = 1.0 / jnp.sqrt(jnp.float32(fan_in))
        w = jax.random.uniform(kw, (fan_in, fan_out), jnp.float32, -bound, bound)
        b = jax.random.uniform(kb, (fan_out,), jnp.float32, -bound, bound)
        return w, b

    w1, b1 = linear(keys[0], keys[1], IN_FEATURES, HIDDEN)
    w2, b2 = linear(keys[2], keys[3], HIDDEN, HIDDEN)
    w3, b3 = linear(keys[4], keys[5], HIDDEN, HIDDEN)
    return (w1, b1, w2, b2, w3, b3)


def pack_params(params):
    """Pack all weights/biases into one zero-padded (SLAB_ROWS, H_PAD) f32 slab."""
    w1, b1, w2, b2, w3, b3 = params
    slab = jnp.zeros((SLAB_ROWS, H_PAD), jnp.float32)
    slab = slab.at[W1_OFF:W1_OFF + IN_FEATURES, :HIDDEN].set(w1)
    slab = slab.at[B1_OFF, :HIDDEN].set(b1)
    slab = slab.at[W2_OFF:W2_OFF + HIDDEN, :HIDDEN].set(w2)
    slab = slab.at[B2_OFF, :HIDDEN].set(b2)
    slab = slab.at[W3_OFF:W3_OFF + HIDDEN, :HIDDEN].set(w3)
    slab = slab.at[B3_OFF, :HIDDEN].set(b3)
    return slab


def dqn_reference(x, params):
    w1, b1, w2, b2, w3, b3 = params
    h = jnp.maximum(x @ w1 + b1, 0.0)
    h = jnp.maximum(h @ w2 + b2, 0.0)
    h = jnp.maximum(h @ w3 + b3, 0.0)
    return h @ w3 + b3


if __name__ == "__main__":
    # TODO(synk): self.bn (BatchNorm1d) and self.output_size are defined in the
    # PyTorch module but never used in forward(), so they are intentionally omitted.
    key = jax.random.PRNGKey(0)
    kx, kp = jax.random.split(key)

    # Batched workload: 256 DQN states (6 features each); the adaptive tile
    # chooser yields 2 grid steps of 128 rows so both v7x TensorCores get work.
    BATCH = 256
    x = jax.random.normal(kx, (BATCH, IN_FEATURES), jnp.float32)
    params = init_params(kp)
    slab = pack_params(params)

    out = dqn_forward(x, slab)
    out = jax.block_until_ready(out)

    ref = dqn_reference(x, params)
    assert out.shape == (BATCH, HIDDEN)
    assert jnp.allclose(out, ref, atol=1e-5, rtol=1e-5), "mismatch vs JAX reference"

    print("KERNEL_OK")
</pallas_src>

<mosaic_0001>
module attributes {stable_mosaic.version = 11 : i64} {
  func.func @dqn_kernel(%arg0: i32, %arg1: memref<128x6xf32, #tpu.memory_space<vmem>>, %arg2: memref<288x128xf32, #tpu.memory_space<vmem>>, %arg3: memref<128x32xf32, #tpu.memory_space<vmem>>) attributes {dimension_semantics = [#tpu.dimension_semantics<parallel>], iteration_bounds = array<i64: 2>, scalar_prefetch = 0 : i64, scratch_operands = 0 : i64, tpu.core_type = #tpu.core_type<tc>, window_params = [{transform_indices = @transform_0, window_bounds = array<i64: 128, 6>}, {pipeline_mode = #tpu.pipeline_mode<synchronous>, transform_indices = @transform_1, window_bounds = array<i64: 288, 128>}, {transform_indices = @transform_2, window_bounds = array<i64: 128, 32>}]} {
    %c0 = arith.constant 0 : index
    %c0_0 = arith.constant 0 : index
    %0 = vector.load %arg1[%c0, %c0_0] : memref<128x6xf32, #tpu.memory_space<vmem>>, vector<128x6xf32>
    %c0_1 = arith.constant 0 : index
    %c0_2 = arith.constant 0 : index
    %1 = vector.load %arg2[%c0_1, %c0_2] : memref<288x128xf32, #tpu.memory_space<vmem>>, vector<6x128xf32>
    %c8 = arith.constant 8 : index
    %c0_3 = arith.constant 0 : index
    %2 = vector.load %arg2[%c8, %c0_3] : memref<288x128xf32, #tpu.memory_space<vmem>>, vector<1x128xf32>
    %c16 = arith.constant 16 : index
    %c0_4 = arith.constant 0 : index
    %3 = vector.load %arg2[%c16, %c0_4] : memref<288x128xf32, #tpu.memory_space<vmem>>, vector<128x128xf32>
    %c144 = arith.constant 144 : index
    %c0_5 = arith.constant 0 : index
    %4 = vector.load %arg2[%c144, %c0_5] : memref<288x128xf32, #tpu.memory_space<vmem>>, vector<1x128xf32>
    %c152 = arith.constant 152 : index
    %c0_6 = arith.constant 0 : index
    %5 = vector.load %arg2[%c152, %c0_6] : memref<288x128xf32, #tpu.memory_space<vmem>>, vector<128x128xf32>
    %c280 = arith.constant 280 : index
    %c0_7 = arith.constant 0 : index
    %6 = vector.load %arg2[%c280, %c0_7] : memref<288x128xf32, #tpu.memory_space<vmem>>, vector<1x128xf32>
    %c152_8 = arith.constant 152 : index
    %c0_9 = arith.constant 0 : index
    %7 = vector.load %arg2[%c152_8, %c0_9] : memref<288x128xf32, #tpu.memory_space<vmem>>, vector<128x32xf32>
    %c280_10 = arith.constant 280 : index
    %c0_11 = arith.constant 0 : index
    %8 = vector.load %arg2[%c280_10, %c0_11] : memref<288x128xf32, #tpu.memory_space<vmem>>, vector<1x32xf32>
    %cst = arith.constant dense<0.000000e+00> : vector<128x128xf32>
    %9 = tpu.matmul %0, %1, %cst {dimension_numbers = #tpu.dot_dimension_numbers<[1], [0], [0], [1], [0, 0, 1, 1], [], []>} : vector<128x6xf32>, vector<6x128xf32>, vector<128x128xf32> -> vector<128x128xf32>
    %10 = vector.broadcast %2 : vector<1x128xf32> to vector<128x128xf32>
    %11 = arith.addf %9, %10 : vector<128x128xf32>
    %cst_12 = arith.constant 0.000000e+00 : f32
    %12 = vector.broadcast %cst_12 : f32 to vector<128x128xf32>
    %13 = arith.maximumf %11, %12 : vector<128x128xf32>
    %cst_13 = arith.constant dense<0.000000e+00> : vector<128x128xf32>
    %14 = tpu.matmul %13, %3, %cst_13 {dimension_numbers = #tpu.dot_dimension_numbers<[1], [0], [0], [1], [0, 0, 1, 1], [], []>} : vector<128x128xf32>, vector<128x128xf32>, vector<128x128xf32> -> vector<128x128xf32>
    %15 = vector.broadcast %4 : vector<1x128xf32> to vector<128x128xf32>
    %16 = arith.addf %14, %15 : vector<128x128xf32>
    %cst_14 = arith.constant 0.000000e+00 : f32
    %17 = vector.broadcast %cst_14 : f32 to vector<128x128xf32>
    %18 = arith.maximumf %16, %17 : vector<128x128xf32>
    %cst_15 = arith.constant dense<0.000000e+00> : vector<128x128xf32>
    %19 = tpu.matmul %18, %5, %cst_15 {dimension_numbers = #tpu.dot_dimension_numbers<[1], [0], [0], [1], [0, 0, 1, 1], [], []>} : vector<128x128xf32>, vector<128x128xf32>, vector<128x128xf32> -> vector<128x128xf32>
    %20 = vector.broadcast %6 : vector<1x128xf32> to vector<128x128xf32>
    %21 = arith.addf %19, %20 : vector<128x128xf32>
    %cst_16 = arith.constant 0.000000e+00 : f32
    %22 = vector.broadcast %cst_16 : f32 to vector<128x128xf32>
    %23 = arith.maximumf %21, %22 : vector<128x128xf32>
    %cst_17 = arith.constant dense<0.000000e+00> : vector<128x32xf32>
    %24 = tpu.matmul %23, %7, %cst_17 {dimension_numbers = #tpu.dot_dimension_numbers<[1], [0], [0], [1], [0, 0, 1, 1], [], []>} : vector<128x128xf32>, vector<128x32xf32>, vector<128x32xf32> -> vector<128x32xf32>
    %25 = vector.broadcast %8 : vector<1x32xf32> to vector<128x32xf32>
    %26 = arith.addf %24, %25 : vector<128x32xf32>
    %c0_18 = arith.constant 0 : index
    %c0_19 = arith.constant 0 : index
    %27 = vector.load %arg3[%c0_18, %c0_19] : memref<128x32xf32, #tpu.memory_space<vmem>>, vector<128x32xf32>
    tpu.vector_store %arg3[%c0_18, %c0_19], %26 {strides = array<i32>} : memref<128x32xf32, #tpu.memory_space<vmem>>, vector<128x32xf32>,
    return
  }
  func.func @transform_0(%arg0: i32) -> (i32, i32) {
    %c0_i32 = arith.constant 0 : i32
    %c0_i32_0 = arith.constant 0 : i32
    return %arg0, %c0_i32 : i32, i32
  }
  func.func @transform_1(%arg0: i32) -> (i32, i32) {
    %c0_i32 = arith.constant 0 : i32
    %c0_i32_0 = arith.constant 0 : i32
    %c0_i32_1 = arith.constant 0 : i32
    return %c0_i32, %c0_i32_0 : i32, i32
  }
  func.func @transform_2(%arg0: i32) -> (i32, i32) {
    %c0_i32 = arith.constant 0 : i32
    %c0_i32_0 = arith.constant 0 : i32
    return %arg0, %c0_i32 : i32, i32
  }
}

</mosaic_0001>

<bundles_post_ra>
// kernel: tpu_custom_call.1
= control target key start
LH: loop header
LB: loop body
LE: loop exit
PB: predicated region body
PF: predicated region fallthrough
CT: control target
= control target key end

     0   :  { %7 = vsyncpa [#allocation3], 0  ;;  %s1523_s9 = smov 0   ;;  %s1791_s0 = inlined_call_operand.vmem [shape: f32[256,6], index: 0, kind: input, shape index: {}]   ;;  %s1792_s1 = inlined_call_operand.hbm [shape: f32[288,128], index: 1, kind: input, shape index: {}]   ;;  %s1793_s2 = inlined_call_operand.vmem [shape: f32[256,32], index: 2, kind: output, shape index: {}]  }
   0x1 LB: > { %s992_s10 = sadd.s32 4294967295, %s1503_s9   ;;  %p994_p0 = scmp.ge.s32.totalorder %s1503_s9, 1  ;;  %s1503_s9 = sphi %s1523_s9, %s13_s9  }
   0x2   : > { %p91_p1 = scmp.lt.s32.totalorder %s1503_s9, 3  ;;  %s1505_s11 = smov [#allocation2]  }
   0x3   : > { %s103_s12 = sshll.u32 %s1505_s11, 4  ;;  %p1537_p3 = scmp.eq.s32.totalorder %s992_s10, 0  ;;  %s104_s12 = int_to_ptr.vmem [resolvable:$true] %s103_s12 }
   0x4   : > { %p1531_p2 = pnand %p994_p0, %p91_p1  ;;  %s1465_s18 = scalar_lea.hbm %s1792_s1, 4608 }
   0x5   : > { %s1798_s14 = scalar_select %p1537_p3, 1, 0 }
   0x6   : > { %s1797_s13 = scalar_select %p1531_p2, 1, 0 }
   0x7   : > { %p1448_p4 = pneg %p1531_p2  ;;  %p1466_p6 = scmp.ne.s32.totalorder %s1792_s1, %s1465_s18 }
   0x8   : > { %p1472_p10 = scmp.lt.u32.totalorder %s1465_s18, %s1792_s1 }
   0x9   : > { %p1545_p5 = pnand %p1537_p3, %p1448_p4 }
   0xb   : > { %p1467_p7 = pneg %p1545_p5 }
   0xd   : > { %p1468_p8 = pnand %p1467_p7, %p1466_p6 }
   0xf   : > { %p1469_p9 = pneg %p1468_p8 }
  0x11   : > { %p1474_p11 = pnand %p1472_p10, %p1469_p9 }
  0x13   : > { %1477 = shalt.err (!%p1474_p11)
}
  0x14   : > { %s1478_s23 = scalar_lea.vmem %s104_s12, 4608  ;;  %p1486_p1 = scmp.lt.s32.totalorder %s104_s12, %s104_s12 }
  0x15   : > { %p1479_p12 = scmp.ne.s32.totalorder %s104_s12, %s1478_s23  ;;  %p1487_p4 = scmp.lt.s32.totalorder %s1478_s23, %s1478_s23 }
  0x17   : > { %p1481_p13 = pnand %p1479_p12, %p1467_p7  ;;  %p1488_p3 = por %p1487_p4, %p1486_p1 }
  0x19   : > { %p1482_p0 = pneg %p1481_p13 }
  0x1b   : > { %p1489_p2 = pnand %p1488_p3, %p1482_p0 }
  0x1d   : > { %1492 = shalt.err (!%p1489_p2)
}
  0x1e   : > { %s1506_s24 = smov 128   ;;  %s1507_s25 = smov 8  }
  0x1f   : > { %1451 = dma.hbm_to_vmem [thread:$0]  (!%p1545_p5), %s1792_s1, 4608, %s104_s12, [#allocation3], %s1506_s24, %s1506_s24, %s1507_s25  }
  0x20   : > { %p1800_p6 = scmp.ne.s32.totalorder %s1797_s13, 0 }
  0x21   : > { %p1801_p8 = scmp.ne.s32.totalorder (!%p1800_p6), %s1798_s14, 0 }
  0x22   : > { %128 = sbr.rel (%p1800_p6) target bundleno = 948 (0x3b4), region = 28 }
  0x29   : > { %1498 = dma.done.wait (%p1801_p8), [#allocation3], 4608  }
  0x2a   : > { %1500 = vsyncadd (%p1801_p8), [#allocation3], 4294962688  ;;  %s999_s28 = sshll.u32 %s992_s10, 4  ;;  %vm267_vm0 = vcmask 1045504   ;;  %vm218_vm1 = vcmask 48128   ;;  %v180_v6 = vld [vmem:[#allocation2 + $0x10] sm:$0xff] }
  0x2b   : > { %p151_p2 = scmp.lt.s32.totalorder %s999_s28, 31  ;;  %v178_v0 = vld [vmem:[#allocation2] sm:$0x3f]  ;;  %v181_v7 = vld [vmem:[#allocation2 + $0x18] sm:$0xff]  ;;  %v183_v9 = vld [vmem:[#allocation2 + $0x28] sm:$0xff]  ;;  %vm907_vm2 = vcmask 261120  }
  0x2c   : > { %1138 = vmatprep.subr.msk.mxu0 %vm267_vm0, %v178_v0  ;;  %v182_v8 = vld [vmem:[#allocation2 + $0x20] sm:$0xff]  ;;  %v1332_v10 = vpack.c.bf16 %v181_v7, %v180_v6  ;;  %v184_v13 = vld [vmem:[#allocation2 + $0x30] sm:$0xff]  ;;  %v185_v14 = vld [vmem:[#allocation2 + $0x38] sm:$0xff] }
  0x2d   : > { %s1803_s28 = smov (!%p151_p2, %s999_s28), 31  ;;  %1139 = vmatpush3.msk.msra.mxu0 %vm267_vm0, %v178_v0  ;;  %v1336_v11 = vpack.c.bf16 %v183_v9, %v182_v8  ;;  %v1340_v16 = vpack.c.bf16 %v185_v14, %v184_v13  ;;  %v186_v18 = vld [vmem:[#allocation2 + $0x40] sm:$0xff]  ;;  %v187_v19 = vld [vmem:[#allocation2 + $0x48] sm:$0xff]  ;;  %v188_v23 = vld [vmem:[#allocation2 + $0x50] sm:$0xff] }
  0x2e   : > { %s1000_s29 = sshll.u32 %s1803_s28, 3  ;;  %1333 = vmatprep.subr.bf16.mxu1 %v1332_v10  ;;  %v1344_v21 = vpack.c.bf16 %v187_v19, %v186_v18  ;;  %v189_v24 = vld [vmem:[#allocation2 + $0x58] sm:$0xff]  ;;  %v190_v28 = vld [vmem:[#allocation2 + $0x60] sm:$0xff]  ;;  %v191_v29 = vld [vmem:[#allocation2 + $0x68] sm:$0xff] }
  0x2f   : > { %s1581_s4 = scalar_lea.vmem %s1791_s0, %s1000_s29  ;;  %1335 = vmatpush3.bf16.msra.mxu1 %v1332_v10  ;;  %v1348_v26 = vpack.c.bf16 %v189_v24, %v188_v23  ;;  %v1352_v31 = vpack.c.bf16 %v191_v29, %v190_v28  ;;  %v192_v33 = vld [vmem:[#allocation2 + $0x70] sm:$0xff]  ;;  %v193_v34 = vld [vmem:[#allocation2 + $0x78] sm:$0xff]  ;;  %v194_v38 = vld [vmem:[#allocation2 + $0x80] sm:$0xff]  ;;  %s1738_s7 = scalar_lea.vmem %s1793_s2, %s1000_s29 }
  0x30   : > { %v162_v1 = vld [vmem:[%s1581_s4] sm:$0xff]  ;;  %v163_v2 = vld [vmem:[%s1581_s4 + $0x8] sm:$0xff]  ;;  %v164_v3 = vld [vmem:[%s1581_s4 + $0x10] sm:$0xff]  ;;  %1337 = vmatprep.subr.bf16.mxu1 %v1336_v11  ;;  %v1356_v36 = vpack.c.bf16 %v193_v34, %v192_v33 }
  0x31   : > { %1140 = vmatprep.mubr.msk.f32.mxu0 %vm218_vm1, %v162_v1  ;;  %v165_v4 = vld [vmem:[%s1581_s4 + $0x18] sm:$0xff]  ;;  %v166_v5 = vld [vmem:[%s1581_s4 + $0x20] sm:$0xff]  ;;  %v167_v12 = vld [vmem:[%s1581_s4 + $0x28] sm:$0xff] }
  0x32   : > { %1141 = vmatmul.mubr.msk.f32.vlgmr.msra.gmra.mrb[0].mxu0 %vm218_vm1, %v163_v2  ;;  %v168_v15 = vld [vmem:[%s1581_s4 + $0x30] sm:$0xff]  ;;  %v169_v17 = vld [vmem:[%s1581_s4 + $0x38] sm:$0xff]  ;;  %v170_v20 = vld [vmem:[%s1581_s4 + $0x40] sm:$0xff] }
  0x33   : > { %1143 = vmatprep.mubr.msk.f32.mxu0 %vm218_vm1, %v164_v3  ;;  %1339 = vmatpush3.bf16.msra.mxu1 %v1336_v11  ;;  %v171_v22 = vld [vmem:[%s1581_s4 + $0x48] sm:$0xff]  ;;  %v172_v25 = vld [vmem:[%s1581_s4 + $0x50] sm:$0xff]  ;;  %v173_v27 = vld [vmem:[%s1581_s4 + $0x58] sm:$0xff] }
  0x34   : > { %1341 = vmatprep.subr.bf16.mxu1 %v1340_v16  ;;  %v174_v30 = vld [vmem:[%s1581_s4 + $0x60] sm:$0xff]  ;;  %v175_v32 = vld [vmem:[%s1581_s4 + $0x68] sm:$0xff]  ;;  %v176_v35 = vld [vmem:[%s1581_s4 + $0x70] sm:$0xff] }
  0x35   : > { %v177_v37 = vld [vmem:[%s1581_s4 + $0x78] sm:$0xff]  ;;  %v195_v39 = vld [vmem:[#allocation2 + $0x88] sm:$0xff]  ;;  %v198_v42 = vld [vmem:[#allocation2 + $0xa0] sm:$0xff] }
  0x36   : > { %1144 = vmatmul.mubr.msk.f32.gmra.mrb[2].mxu0 %vm218_vm1, %v165_v4  ;;  %v1360_v40 = vpack.c.bf16 %v195_v39, %v194_v38  ;;  %v197_v41 = vld [vmem:[#allocation2 + $0x98] sm:$0xff]  ;;  %v199_v43 = vld [vmem:[#allocation2 + $0xa8] sm:$0xff]  ;;  %v200_v45 = vld [vmem:[#allocation2 + $0xb0] sm:$0xff] }
  0x37   : > { %1146 = vmatprep.mubr.msk.f32.mxu0 %vm218_vm1, %v166_v5  ;;  %1343 = vmatpush3.bf16.msra.mxu1 %v1340_v16  ;;  %v1615_v44 = vpack.c.bf16 %v198_v42, %v197_v41  ;;  %v1617_v46 = vpack.c.bf16 %v200_v45, %v199_v43  ;;  %v201_v47 = vld [vmem:[#allocation2 + $0xb8] sm:$0xff]  ;;  %v202_v48 = vld [vmem:[#allocation2 + $0xc0] sm:$0xff]  ;;  %v203_v50 = vld [vmem:[#allocation2 + $0xc8] sm:$0xff] }
  0x38   : > { %1345 = vmatprep.subr.bf16.mxu1 %v1344_v21  ;;  %v1623_v49 = vpack.c.bf16 %v202_v48, %v201_v47  ;;  %v204_v51 = vld [vmem:[#allocation2 + $0xd0] sm:$0xff]  ;;  %v205_v53 = vld [vmem:[#allocation2 + $0xd8] sm:$0xff]  ;;  %v206_v54 = vld [vmem:[#allocation2 + $0xe0] sm:$0xff] }
  0x39   : > { %1365 = vmatprep.subr.bf16.mxu0 %v1615_v44  ;;  %v1627_v52 = vpack.c.bf16 %v204_v51, %v203_v50  ;;  %v1631_v55 = vpack.c.bf16 %v206_v54, %v205_v53  ;;  %v207_v56 = vld [vmem:[#allocation2 + $0xe8] sm:$0xff]  ;;  %v208_v57 = vld [vmem:[#allocation2 + $0xf0] sm:$0xff]  ;;  %v209_v59 = vld [vmem:[#allocation2 + $0xf8] sm:$0xff] }
  0x3a   : > { %1147 = vmatmul.mubr.msk.f32.gmra.mrb[4].mxu0 %vm218_vm1, %v167_v12  ;;  %v1635_v58 = vpack.c.bf16 %v208_v57, %v207_v56  ;;  %v210_v60 = vld [vmem:[#allocation2 + $0x100] sm:$0xff]  ;;  %v1644_v62 = vld [vmem:[#allocation2 + $0x8] ss:$0 sm:$0xff]  ;;  %v212_v51 = vld [vmem:[#allocation2 + $0x110] sm:$0xff] }
  0x3b   : > { %1149 = vmatprep.mubr.msk.f32.mxu0 %vm218_vm1, %v168_v15  ;;  %1347 = vmatpush3.bf16.msra.mxu1 %v1344_v21  ;;  %v1639_v61 = vpack.c.bf16 %v210_v60, %v209_v59  ;;  %v211_v50 = vld [vmem:[#allocation2 + $0x108] sm:$0xff]  ;;  %v1682_v54 = vld [vmem:[#allocation2 + $0x90] ss:$0 sm:$0xff] }
  0x3c   : > { %1349 = vmatprep.subr.bf16.mxu1 %v1348_v26  ;;  %1367 = vmatpush3.bf16.msra.mxu0 %v1615_v44  ;;  %v1675_v53 = vpack.c.bf16 %v212_v51, %v211_v50 }
  0x3d   : > { %1369 = vmatprep.subr.bf16.mxu0 %v1617_v46 }
  0x3e   : > { %1150 = vmatmul.mubr.msk.f32.gmra.mrb[6].mxu0 %vm218_vm1, %v169_v17 }
  0x3f   : > { %1152 = vmatprep.mubr.msk.f32.mxu0 %vm218_vm1, %v170_v20  ;;  %1351 = vmatpush3.bf16.msra.mxu1 %v1348_v26 }
  0x40   : > { %1353 = vmatprep.subr.bf16.mxu1 %v1352_v31  ;;  %1371 = vmatpush3.bf16.msra.mxu0 %v1617_v46 }
  0x41   : > { %1373 = vmatprep.subr.bf16.mxu0 %v1623_v49 }
  0x42   : > { %1153 = vmatmul.mubr.msk.f32.gmra.mrb[8].mxu0 %vm218_vm1, %v171_v22 }
  0x43   : > { %1155 = vmatprep.mubr.msk.f32.mxu0 %vm218_vm1, %v172_v25  ;;  %1355 = vmatpush3.bf16.msra.mxu1 %v1352_v31 }
  0x44   : > { %1357 = vmatprep.subr.bf16.mxu1 %v1356_v36  ;;  %1375 = vmatpush3.bf16.msra.mxu0 %v1623_v49 }
  0x45   : > { %1377 = vmatprep.subr.bf16.mxu0 %v1627_v52 }
  0x46   : > { %1156 = vmatmul.mubr.msk.f32.gmra.mrb[10].mxu0 %vm218_vm1, %v173_v27 }
  0x47   : > { %1158 = vmatprep.mubr.msk.f32.mxu0 %vm218_vm1, %v174_v30  ;;  %1359 = vmatpush3.bf16.msra.mxu1 %v1356_v36 }
  0x48   : > { %1361 = vmatprep.subr.bf16.mxu1 %v1360_v40  ;;  %1379 = vmatpush3.bf16.msra.mxu0 %v1627_v52 }
  0x49   : > { %1381 = vmatprep.subr.bf16.mxu0 %v1631_v55 }
  0x4a   : > { %1159 = vmatmul.mubr.msk.f32.gmra.mrb[12].mxu0 %vm218_vm1, %v175_v32 }
  0x4b   : > { %1161 = vmatprep.mubr.msk.f32.mxu0 %vm218_vm1, %v176_v35  ;;  %1363 = vmatpush3.bf16.msra.mxu1 %v1360_v40 }
  0x4c   : > { %1428 = vmatprep.subr.bf16.mxu1 %v1615_v44  ;;  %1383 = vmatpush3.bf16.msra.mxu0 %v1631_v55 }
  0x4d   : > { %1385 = vmatprep.subr.bf16.mxu0 %v1635_v58 }
  0x4e   : > { %1162 = vmatmul.mubr.msk.f32.gmra.mrb[14].mxu0 %vm218_vm1, %v177_v37 }
  0x50   : > { %1387 = vmatpush3.bf16.msra.mxu0 %v1635_v58 }
  0x51   : > { %1389 = vmatprep.subr.bf16.mxu0 %v1639_v61 }
  0x54   : > { %1391 = vmatpush3.bf16.msra.mxu0 %v1639_v61 }
  0x55   : > { %1393 = vmatprep.subr.bf16.mxu0 %v1675_v53 }
  0x58   : > { %1395 = vmatpush3.bf16.msra.mxu0 %v1675_v53 }
  0x59   : > { %1397 = vmatprep.subr.bf16.mxu0 %v1615_v44 }
 0x105   : > { %v1142_v63 = vpop.f32.mrb[0].mxu0 }
 0x106   : > { %v343_v0 = vadd.f32 %v1142_v63, %v1644_v62  ;;  %v337_v1 = vpop.f32.mrb[1].mxu0 }
 0x107   : > { %v338_v2 = vadd.f32 %v1644_v62, %v337_v1 }
 0x108   : > { %v417_v5 = vmax.f32 %v343_v0, 0.0 }
 0x109   : > { %v1145_v3 = vpop.f32.mrb[2].mxu0  ;;  %v416_v4 = vmax.f32 %v338_v2, 0.0 }
 0x10a   : > { %v353_v6 = vadd.f32 %v1145_v3, %v1644_v62  ;;  %v347_v7 = vpop.f32.mrb[3].mxu0 }
 0x10b   : > { %v348_v8 = vadd.f32 %v1644_v62, %v347_v7  ;;  %1196 = vmatprep.mubr.f32.mxu1 %v416_v4 }
 0x10c   : > { %1197 = vmatmul.mubr.f32.vlgmr.msra.gmra.mrb[0].mxu1 %v417_v5  ;;  %v419_v11 = vmax.f32 %v353_v6, 0.0 }
 0x10d   : > { %v418_v9 = vmax.f32 %v348_v8, 0.0  ;;  %v1148_v10 = vpop.f32.mrb[4].mxu0  ;;  %1436 = vmatpush3.bf16.msra.mxu1 %v1615_v44 }
 0x10e   : > { %v363_v12 = vadd.f32 %v1148_v10, %v1644_v62  ;;  %v357_v13 = vpop.f32.mrb[5].mxu0  ;;  %1429 = vmatprep.subr.bf16.mxu1 %v1617_v46 }
 0x10f   : > { %v358_v14 = vadd.f32 %v1644_v62, %v357_v13  ;;  %1199 = vmatprep.mubr.f32.mxu1 %v418_v9 }
 0x110   : > { %1200 = vmatmul.mubr.f32.gmra.mrb[2].mxu1 %v419_v11  ;;  %v421_v17 = vmax.f32 %v363_v12, 0.0 }
 0x111   : > { %v420_v15 = vmax.f32 %v358_v14, 0.0  ;;  %v1151_v16 = vpop.f32.mrb[6].mxu0  ;;  %1437 = vmatpush3.bf16.msra.mxu1 %v1617_v46 }
 0x112   : > { %v373_v18 = vadd.f32 %v1151_v16, %v1644_v62  ;;  %v367_v19 = vpop.f32.mrb[7].mxu0  ;;  %1430 = vmatprep.subr.bf16.mxu1 %v1623_v49 }
 0x113   : > { %v368_v20 = vadd.f32 %v1644_v62, %v367_v19  ;;  %1202 = vmatprep.mubr.f32.mxu1 %v420_v15 }
 0x114   : > { %1203 = vmatmul.mubr.f32.gmra.mrb[4].mxu1 %v421_v17  ;;  %v423_v23 = vmax.f32 %v373_v18, 0.0 }
 0x115   : > { %v422_v21 = vmax.f32 %v368_v20, 0.0  ;;  %v1154_v22 = vpop.f32.mrb[8].mxu0  ;;  %1438 = vmatpush3.bf16.msra.mxu1 %v1623_v49 }
 0x116   : > { %v383_v24 = vadd.f32 %v1154_v22, %v1644_v62  ;;  %v377_v25 = vpop.f32.mrb[9].mxu0  ;;  %1431 = vmatprep.subr.bf16.mxu1 %v1627_v52 }
 0x117   : > { %v378_v26 = vadd.f32 %v1644_v62, %v377_v25  ;;  %1205 = vmatprep.mubr.f32.mxu1 %v422_v21 }
 0x118   : > { %1206 = vmatmul.mubr.f32.gmra.mrb[6].mxu1 %v423_v23  ;;  %v425_v29 = vmax.f32 %v383_v24, 0.0 }
 0x119   : > { %v424_v27 = vmax.f32 %v378_v26, 0.0  ;;  %v1157_v28 = vpop.f32.mrb[10].mxu0  ;;  %1439 = vmatpush3.bf16.msra.mxu1 %v1627_v52 }
 0x11a   : > { %v393_v30 = vadd.f32 %v1157_v28, %v1644_v62  ;;  %v387_v31 = vpop.f32.mrb[11].mxu0  ;;  %1432 = vmatprep.subr.bf16.mxu1 %v1631_v55 }
 0x11b   : > { %v388_v32 = vadd.f32 %v1644_v62, %v387_v31  ;;  %1208 = vmatprep.mubr.f32.mxu1 %v424_v27 }
 0x11c   : > { %1209 = vmatmul.mubr.f32.gmra.mrb[8].mxu1 %v425_v29  ;;  %v427_v35 = vmax.f32 %v393_v30, 0.0 }
 0x11d   : > { %v426_v33 = vmax.f32 %v388_v32, 0.0  ;;  %v1160_v34 = vpop.f32.mrb[12].mxu0  ;;  %1440 = vmatpush3.bf16.msra.mxu1 %v1631_v55 }
 0x11e   : > { %v403_v36 = vadd.f32 %v1160_v34, %v1644_v62  ;;  %v397_v37 = vpop.f32.mrb[13].mxu0  ;;  %1433 = vmatprep.subr.bf16.mxu1 %v1635_v58 }
 0x11f   : > { %v398_v38 = vadd.f32 %v1644_v62, %v397_v37  ;;  %1211 = vmatprep.mubr.f32.mxu1 %v426_v33 }
 0x120   : > { %1212 = vmatmul.mubr.f32.gmra.mrb[10].mxu1 %v427_v35  ;;  %v429_v41 = vmax.f32 %v403_v36, 0.0 }
 0x121   : > { %v428_v39 = vmax.f32 %v398_v38, 0.0  ;;  %v1163_v40 = vpop.f32.mrb[14].mxu0  ;;  %1441 = vmatpush3.bf16.msra.mxu1 %v1635_v58 }
 0x122   : > { %v413_v42 = vadd.f32 %v1163_v40, %v1644_v62  ;;  %v407_v43 = vpop.f32.mrb[15].mxu0  ;;  %1434 = vmatprep.subr.bf16.mxu1 %v1639_v61 }
 0x123   : > { %v408_v45 = vadd.f32 %v1644_v62, %v407_v43  ;;  %1214 = vmatprep.mubr.f32.mxu1 %v428_v39 }
 0x124   : > { %1215 = vmatmul.mubr.f32.gmra.mrb[12].mxu1 %v429_v41  ;;  %v431_v48 = vmax.f32 %v413_v42, 0.0 }
 0x125   : > { %v430_v47 = vmax.f32 %v408_v45, 0.0  ;;  %1442 = vmatpush3.bf16.msra.mxu1 %v1639_v61 }
 0x126   : > { %1435 = vmatprep.subr.bf16.mxu1 %v1675_v53 }
 0x127   : > { %1217 = vmatprep.mubr.f32.mxu1 %v430_v47 }
 0x128   : > { %1218 = vmatmul.mubr.f32.gmra.mrb[14].mxu1 %v431_v48 }
 0x129   : > { %1443 = vmatpush3.bf16.msra.mxu1 %v1675_v53 }
 0x1df   : > { %v1198_v56 = vpop.f32.mrb[0].mxu1 }
 0x1e0   : > { %v508_v57 = vadd.f32 %v1198_v56, %v1682_v54  ;;  %v502_v59 = vpop.f32.mrb[1].mxu1 }
 0x1e1   : > { %v503_v60 = vadd.f32 %v1682_v54, %v502_v59 }
 0x1e2   : > { %v582_v0 = vmax.f32 %v508_v57, 0.0 }
 0x1e3   : > { %v581_v62 = vmax.f32 %v503_v60, 0.0  ;;  %v1201_v63 = vpop.f32.mrb[2].mxu1 }
 0x1e4   : > { %v518_v1 = vadd.f32 %v1201_v63, %v1682_v54  ;;  %v512_v2 = vpop.f32.mrb[3].mxu1 }
 0x1e5   : > { %v513_v3 = vadd.f32 %v1682_v54, %v512_v2  ;;  %1252 = vmatprep.mubr.f32.mxu0 %v581_v62 }
 0x1e6   : > { %1253 = vmatmul.mubr.f32.vlgmr.msra.gmra.mrb[16].mxu0 %v582_v0  ;;  %v584_v6 = vmax.f32 %v518_v1, 0.0 }
 0x1e7   : > { %v583_v4 = vmax.f32 %v513_v3, 0.0  ;;  %v1204_v5 = vpop.f32.mrb[4].mxu1  ;;  %1399 = vmatpush3.bf16.msra.mxu0 %v1615_v44 }
 0x1e8   : > { %v528_v7 = vadd.f32 %v1204_v5, %v1682_v54  ;;  %v522_v8 = vpop.f32.mrb[5].mxu1  ;;  %1401 = vmatprep.subr.bf16.mxu0 %v1617_v46 }
 0x1e9   : > { %v523_v9 = vadd.f32 %v1682_v54, %v522_v8  ;;  %1255 = vmatprep.mubr.f32.mxu0 %v583_v4 }
 0x1ea   : > { %1256 = vmatmul.mubr.f32.gmra.mrb[18].mxu0 %v584_v6  ;;  %v586_v12 = vmax.f32 %v528_v7, 0.0 }
 0x1eb   : > { %v585_v10 = vmax.f32 %v523_v9, 0.0  ;;  %v1207_v11 = vpop.f32.mrb[6].mxu1  ;;  %1403 = vmatpush3.bf16.msra.mxu0 %v1617_v46 }
 0x1ec   : > { %v538_v13 = vadd.f32 %v1207_v11, %v1682_v54  ;;  %v532_v14 = vpop.f32.mrb[7].mxu1  ;;  %1405 = vmatprep.subr.bf16.mxu0 %v1623_v49 }
 0x1ed   : > { %v533_v44 = vadd.f32 %v1682_v54, %v532_v14  ;;  %1258 = vmatprep.mubr.f32.mxu0 %v585_v10 }
 0x1ee   : > { %1259 = vmatmul.mubr.f32.gmra.mrb[20].mxu0 %v586_v12  ;;  %v588_v17 = vmax.f32 %v538_v13, 0.0 }
 0x1ef   : > { %v587_v15 = vmax.f32 %v533_v44, 0.0  ;;  %v1210_v16 = vpop.f32.mrb[8].mxu1  ;;  %1407 = vmatpush3.bf16.msra.mxu0 %v1623_v49 }
 0x1f0   : > { %v548_v18 = vadd.f32 %v1210_v16, %v1682_v54  ;;  %v542_v19 = vpop.f32.mrb[9].mxu1  ;;  %1409 = vmatprep.subr.bf16.mxu0 %v1627_v52 }
 0x1f1   : > { %v543_v46 = vadd.f32 %v1682_v54, %v542_v19  ;;  %1261 = vmatprep.mubr.f32.mxu0 %v587_v15 }
 0x1f2   : > { %1262 = vmatmul.mubr.f32.gmra.mrb[22].mxu0 %v588_v17  ;;  %v590_v22 = vmax.f32 %v548_v18, 0.0 }
 0x1f3   : > { %v589_v20 = vmax.f32 %v543_v46, 0.0  ;;  %v1213_v21 = vpop.f32.mrb[10].mxu1  ;;  %1411 = vmatpush3.bf16.msra.mxu0 %v1627_v52 }
 0x1f4   : > { %v558_v23 = vadd.f32 %v1213_v21, %v1682_v54  ;;  %v552_v24 = vpop.f32.mrb[11].mxu1  ;;  %1413 = vmatprep.subr.bf16.mxu0 %v1631_v55 }
 0x1f5   : > { %v553_v49 = vadd.f32 %v1682_v54, %v552_v24  ;;  %1264 = vmatprep.mubr.f32.mxu0 %v589_v20 }
 0x1f6   : > { %1265 = vmatmul.mubr.f32.gmra.mrb[24].mxu0 %v590_v22  ;;  %v592_v27 = vmax.f32 %v558_v23, 0.0 }
 0x1f7   : > { %v591_v25 = vmax.f32 %v553_v49, 0.0  ;;  %v1216_v26 = vpop.f32.mrb[12].mxu1  ;;  %1415 = vmatpush3.bf16.msra.mxu0 %v1631_v55 }
 0x1f8   : > { %v568_v28 = vadd.f32 %v1216_v26, %v1682_v54  ;;  %v562_v29 = vpop.f32.mrb[13].mxu1  ;;  %1417 = vmatprep.subr.bf16.mxu0 %v1635_v58 }
 0x1f9   : > { %v563_v52 = vadd.f32 %v1682_v54, %v562_v29  ;;  %1267 = vmatprep.mubr.f32.mxu0 %v591_v25 }
 0x1fa   : > { %1268 = vmatmul.mubr.f32.gmra.mrb[26].mxu0 %v592_v27  ;;  %v594_v32 = vmax.f32 %v568_v28, 0.0 }
 0x1fb   : > { %v593_v30 = vmax.f32 %v563_v52, 0.0  ;;  %v1219_v31 = vpop.f32.mrb[14].mxu1  ;;  %1419 = vmatpush3.bf16.msra.mxu0 %v1635_v58  ;;  %v1715_v58 = vld [vmem:[#allocation2 + $0x118] ss:$0 sm:$0xff] }
 0x1fc   : > { %v578_v33 = vadd.f32 %v1219_v31, %v1682_v54  ;;  %v572_v34 = vpop.f32.mrb[15].mxu1  ;;  %1421 = vmatprep.subr.bf16.mxu0 %v1639_v61 }
 0x1fd   : > { %v573_v55 = vadd.f32 %v1682_v54, %v572_v34  ;;  %1270 = vmatprep.mubr.f32.mxu0 %v593_v30 }
 0x1fe   : > { %1271 = vmatmul.mubr.f32.gmra.mrb[28].mxu0 %v594_v32  ;;  %v596_v36 = vmax.f32 %v578_v33, 0.0 }
 0x1ff   : > { %v595_v35 = vmax.f32 %v573_v55, 0.0  ;;  %1423 = vmatpush3.bf16.msra.mxu0 %v1639_v61 }
 0x200   : > { %1425 = vmatprep.subr.bf16.mxu0 %v1675_v53 }
 0x201   : > { %1273 = vmatprep.mubr.f32.mxu0 %v595_v35 }
 0x202   : > { %1274 = vmatmul.mubr.f32.gmra.mrb[30].mxu0 %v596_v36 }
 0x203   : > { %1427 = vmatpush3.bf16.msra.mxu0 %v1675_v53 }
 0x2b9   : > { %v1254_v37 = vpop.f32.mrb[16].mxu0 }
 0x2ba   : > { %v673_v38 = vadd.f32 %v1254_v37, %v1715_v58  ;;  %v667_v39 = vpop.f32.mrb[17].mxu0 }
 0x2bb   : > { %v668_v40 = vadd.f32 %v1715_v58, %v667_v39 }
 0x2bc   : > { %v747_v43 = vmax.f32 %v673_v38, 0.0 }
 0x2bd   : > { %v746_v41 = vmax.f32 %v668_v40, 0.0  ;;  %v1257_v42 = vpop.f32.mrb[18].mxu0 }
 0x2be   : > { %v683_v61 = vadd.f32 %v1257_v42, %v1715_v58  ;;  %v677_v45 = vpop.f32.mrb[19].mxu0 }
 0x2bf   : > { %v678_v47 = vadd.f32 %v1715_v58, %v677_v45  ;;  %1308 = vmatprep.mubr.f32.mxu0 %v746_v41 }
 0x2c0   : > { %1309 = vmatmul.mubr.f32.vlgmr.msra.gmra.mrb[32].mxu0 %v747_v43  ;;  %v749_v51 = vmax.f32 %v683_v61, 0.0 }
 0x2c1   : > { %v748_v48 = vmax.f32 %v678_v47, 0.0  ;;  %v1260_v50 = vpop.f32.mrb[20].mxu0 }
 0x2c2   : > { %v693_v53 = vadd.f32 %v1260_v50, %v1715_v58  ;;  %v687_v54 = vpop.f32.mrb[21].mxu0 }
 0x2c3   : > { %v688_v56 = vadd.f32 %v1715_v58, %v687_v54  ;;  %1311 = vmatprep.mubr.f32.mxu0 %v748_v48 }
 0x2c4   : > { %1312 = vmatmul.mubr.f32.gmra.mrb[34].mxu0 %v749_v51  ;;  %v751_v60 = vmax.f32 %v693_v53, 0.0 }
 0x2c5   : > { %v750_v57 = vmax.f32 %v688_v56, 0.0  ;;  %v1263_v59 = vpop.f32.mrb[22].mxu0 }
 0x2c6   : > { %v703_v62 = vadd.f32 %v1263_v59, %v1715_v58  ;;  %v697_v63 = vpop.f32.mrb[23].mxu0 }
 0x2c7   : > { %v698_v0 = vadd.f32 %v1715_v58, %v697_v63  ;;  %1314 = vmatprep.mubr.f32.mxu0 %v750_v57 }
 0x2c8   : > { %1315 = vmatmul.mubr.f32.gmra.mrb[36].mxu0 %v751_v60  ;;  %v753_v3 = vmax.f32 %v703_v62, 0.0 }
 0x2c9   : > { %v752_v1 = vmax.f32 %v698_v0, 0.0  ;;  %v1266_v2 = vpop.f32.mrb[24].mxu0 }
 0x2ca   : > { %v713_v4 = vadd.f32 %v1266_v2, %v1715_v58  ;;  %v707_v5 = vpop.f32.mrb[25].mxu0 }
 0x2cb   : > { %v708_v6 = vadd.f32 %v1715_v58, %v707_v5  ;;  %1317 = vmatprep.mubr.f32.mxu1 %v752_v1 }
 0x2cc   : > { %1318 = vmatmul.mubr.f32.vlgmr.msra.gmra.mrb[16].mxu1 %v753_v3  ;;  %v755_v9 = vmax.f32 %v713_v4, 0.0 }
 0x2cd   : > { %v754_v7 = vmax.f32 %v708_v6, 0.0  ;;  %v1269_v8 = vpop.f32.mrb[26].mxu0 }
 0x2ce   : > { %v723_v10 = vadd.f32 %v1269_v8, %v1715_v58  ;;  %v717_v11 = vpop.f32.mrb[27].mxu0 }
 0x2cf   : > { %v718_v12 = vadd.f32 %v1715_v58, %v717_v11  ;;  %1320 = vmatprep.mubr.f32.mxu1 %v754_v7 }
 0x2d0   : > { %1321 = vmatmul.mubr.f32.gmra.mrb[18].mxu1 %v755_v9  ;;  %v757_v44 = vmax.f32 %v723_v10, 0.0 }
 0x2d1   : > { %v756_v13 = vmax.f32 %v718_v12, 0.0  ;;  %v1272_v14 = vpop.f32.mrb[28].mxu0 }
 0x2d2   : > { %v733_v15 = vadd.f32 %v1272_v14, %v1715_v58  ;;  %v727_v16 = vpop.f32.mrb[29].mxu0 }
 0x2d3   : > { %v728_v17 = vadd.f32 %v1715_v58, %v727_v16  ;;  %1323 = vmatprep.mubr.f32.mxu1 %v756_v13 }
 0x2d4   : > { %1324 = vmatmul.mubr.f32.gmra.mrb[20].mxu1 %v757_v44  ;;  %v759_v46 = vmax.f32 %v733_v15, 0.0 }
 0x2d5   : > { %v758_v18 = vmax.f32 %v728_v17, 0.0  ;;  %v1275_v19 = vpop.f32.mrb[30].mxu0 }
 0x2d6   : > { %v743_v20 = vadd.f32 %v1275_v19, %v1715_v58  ;;  %v737_v21 = vpop.f32.mrb[31].mxu0 }
 0x2d7   : > { %v738_v22 = vadd.f32 %v1715_v58, %v737_v21  ;;  %1326 = vmatprep.mubr.f32.mxu1 %v758_v18 }
 0x2d8   : > { %1327 = vmatmul.mubr.f32.gmra.mrb[22].mxu1 %v759_v46  ;;  %v761_v24 = vmax.f32 %v743_v20, 0.0 }
 0x2d9   : > { %v760_v23 = vmax.f32 %v738_v22, 0.0 }
 0x2db   : > { %1329 = vmatprep.mubr.f32.mxu1 %v760_v23 }
 0x2dc   : > { %1330 = vmatmul.mubr.f32.gmra.mrb[24].mxu1 %v761_v24 }
 0x393   : > { %v1310_v49 = vpop.f32.mrb[32].mxu0 }
 0x394   : > { %v834_v25 = vadd.f32 %v1310_v49, %v1715_v58  ;;  %v828_v26 = vpop.f32.mrb[33].mxu0 }
 0x395   : > { %v829_v27 = vadd.f32 %v1715_v58, %v828_v26 }
 0x396   : > { %909 = vst.msk [vmem:[%s1738_s7 + $0x8] sm:$0xff] %vm907_vm2, %v834_v25 }
 0x397   : > { %908 = vst.msk [vmem:[%s1738_s7] sm:$0xff] %vm907_vm2, %v829_v27  ;;  %v1313_v28 = vpop.f32.mrb[34].mxu0 }
 0x398   : > { %v844_v29 = vadd.f32 %v1313_v28, %v1715_v58  ;;  %v838_v52 = vpop.f32.mrb[35].mxu0 }
 0x399   : > { %v839_v30 = vadd.f32 %v1715_v58, %v838_v52 }
 0x39a   : > { %911 = vst.msk [vmem:[%s1738_s7 + $0x18] sm:$0xff] %vm907_vm2, %v844_v29 }
 0x39b   : > { %910 = vst.msk [vmem:[%s1738_s7 + $0x10] sm:$0xff] %vm907_vm2, %v839_v30  ;;  %v1316_v31 = vpop.f32.mrb[36].mxu0 }
 0x39c   : > { %v854_v32 = vadd.f32 %v1316_v31, %v1715_v58  ;;  %v848_v33 = vpop.f32.mrb[37].mxu0 }
 0x39d   : > { %v849_v34 = vadd.f32 %v1715_v58, %v848_v33 }
 0x39e   : > { %913 = vst.msk [vmem:[%s1738_s7 + $0x28] sm:$0xff] %vm907_vm2, %v854_v32 }
 0x39f   : > { %912 = vst.msk [vmem:[%s1738_s7 + $0x20] sm:$0xff] %vm907_vm2, %v849_v34  ;;  %v1319_v55 = vpop.f32.mrb[16].mxu1 }
 0x3a0   : > { %v864_v35 = vadd.f32 %v1319_v55, %v1715_v58  ;;  %v858_v36 = vpop.f32.mrb[17].mxu1 }
 0x3a1   : > { %v859_v37 = vadd.f32 %v1715_v58, %v858_v36 }
 0x3a2   : > { %915 = vst.msk [vmem:[%s1738_s7 + $0x38] sm:$0xff] %vm907_vm2, %v864_v35 }
 0x3a3   : > { %914 = vst.msk [vmem:[%s1738_s7 + $0x30] sm:$0xff] %vm907_vm2, %v859_v37  ;;  %v1322_v38 = vpop.f32.mrb[18].mxu1 }
 0x3a4   : > { %v874_v39 = vadd.f32 %v1322_v38, %v1715_v58  ;;  %v868_v40 = vpop.f32.mrb[19].mxu1 }
 0x3a5   : > { %v869_v41 = vadd.f32 %v1715_v58, %v868_v40 }
 0x3a6   : > { %917 = vst.msk [vmem:[%s1738_s7 + $0x48] sm:$0xff] %vm907_vm2, %v874_v39 }
 0x3a7   : > { %916 = vst.msk [vmem:[%s1738_s7 + $0x40] sm:$0xff] %vm907_vm2, %v869_v41  ;;  %v1325_v42 = vpop.f32.mrb[20].mxu1 }
 0x3a8   : > { %v884_v43 = vadd.f32 %v1325_v42, %v1715_v58  ;;  %v878_v61 = vpop.f32.mrb[21].mxu1 }
 0x3a9   : > { %v879_v45 = vadd.f32 %v1715_v58, %v878_v61 }
 0x3aa   : > { %919 = vst.msk [vmem:[%s1738_s7 + $0x58] sm:$0xff] %vm907_vm2, %v884_v43 }
 0x3ab   : > { %918 = vst.msk [vmem:[%s1738_s7 + $0x50] sm:$0xff] %vm907_vm2, %v879_v45  ;;  %v1328_v47 = vpop.f32.mrb[22].mxu1 }
 0x3ac   : > { %v894_v48 = vadd.f32 %v1328_v47, %v1715_v58  ;;  %v888_v50 = vpop.f32.mrb[23].mxu1 }
 0x3ad   : > { %v889_v51 = vadd.f32 %v1715_v58, %v888_v50 }
 0x3ae   : > { %921 = vst.msk [vmem:[%s1738_s7 + $0x68] sm:$0xff] %vm907_vm2, %v894_v48 }
 0x3af   : > { %920 = vst.msk [vmem:[%s1738_s7 + $0x60] sm:$0xff] %vm907_vm2, %v889_v51  ;;  %v1331_v53 = vpop.f32.mrb[24].mxu1 }
 0x3b0   : > { %v904_v54 = vadd.f32 %v1331_v53, %v1715_v58  ;;  %v898_v56 = vpop.f32.mrb[25].mxu1 }
 0x3b1   : > { %v899_v57 = vadd.f32 %v1715_v58, %v898_v56 }
 0x3b2   : > { %923 = vst.msk [vmem:[%s1738_s7 + $0x78] sm:$0xff] %vm907_vm2, %v904_v54 }
 0x3b3   : > { %922 = vst.msk [vmem:[%s1738_s7 + $0x70] sm:$0xff] %vm907_vm2, %v899_v57 }
 0x3b4 PF: > { %s13_s9 = sadd.s32 1, %s1503_s9  }
 0x3b5   : > { %p10_p3 = scmp.ge.s32.totalorder %s13_s9, 4  }
 0x3b7   :  { %12 = sbr.rel (!%p10_p3) target bundleno = 1 (0x1), region = 63 }
 0x3be   :  { %946 = vsyncpa [#allocation3], 1 }
 0x3bf   :  { %948 = vsyncpa [#allocation3 + $0x1], 1 }

</bundles_post_ra>
